<compile_context>
chip_gen: v7x
topology: tpu7x:2x2x1
jax: 0.10.0
libtpu: 0.0.40
codegen_flags: <defaults>
</compile_context>

<pallas_src>
import functools

import jax
import jax.numpy as jnp
from jax.experimental import pallas as pl
from jax.experimental.pallas import tpu as pltpu


def _round_up(n, m):
    return ((n + m - 1) // m) * m


def _cdiv(a, b):
    return (a + b - 1) // b


def _anfis_kernel(x_ref, rep_ref, inv_a_ref, b_ref, c_ref,
                  w1t_ref, b1_ref, w2_ref, b2_ref, o_ref, *, b_is_one):
    """One batch tile, batch-on-lanes: x^T (F, TB) -> out^T (1, TB)."""
    # Replicate each input feature M times along sublanes: (FM, F) @ (F, TB).
    # 0/1 matrix on the otherwise-idle MXU; result is already lane-dense.
    x_rep = jnp.dot(rep_ref[...], x_ref[...], preferred_element_type=jnp.float32)

    # Bell MF: 1 / (1 + |(x - c)/a|^(2b)); params broadcast along lanes.
    z = (x_rep - c_ref[...]) * inv_a_ref[...]                    # (FM, TB)
    if b_is_one:
        # b == 1 (the module's init): 1/(1 + z^2) -> one approx EUP reciprocal.
        mf = pl.reciprocal(1.0 + z * z, approx=True)
    else:
        # 1/(1 + e^u) = 0.5*(1 - tanh(u/2)) with u/2 = b*log|z|.
        # Clamp |z| away from 0 so z==0 (any b, incl. b==0) matches the pow
        # form's limit with no 0*(-inf) NaN, and keep the full f32 exp range.
        log_z = jnp.log(jnp.maximum(jnp.abs(z), jnp.finfo(jnp.float32).tiny))
        mf = 0.5 * (1.0 - jnp.tanh(b_ref[...] * log_z))          # (FM, TB)

    # rules: Linear -> ReLU -> Linear, batch kept on the MXU N / lane axis.
    h = jnp.dot(w1t_ref[...], mf, preferred_element_type=jnp.float32) + b1_ref[...]
    h = jnp.maximum(h, 0.0)                                      # (H, TB)
    out = jnp.dot(w2_ref[...], h, preferred_element_type=jnp.float32) + b2_ref[0]
    o_ref[...] = out                                             # (1, TB) lane-dense


@functools.partial(jax.jit, static_argnames=("block_b", "b_is_one"))
def _anfis_forward(x, a, b, c, w1, b1, w2, b2, *, block_b, b_is_one):
    B, F = x.shape
    M = a.shape[1]
    FM = F * M
    H = w1.shape[1]

    # Batch tile sits on the lane axis: multiple of 128, capped by block_b.
    # Split into >= 2 blocks whenever the batch is big enough so v7x's two
    # TensorCores both get work on the "parallel" axis (no-op on v5e/v6e).
    TB = min(block_b, _round_up(B, 128))
    TB = max(128, (TB // 128) * 128)
    if _cdiv(B, TB) == 1 and TB > 128:
        TB = max(128, _round_up(_cdiv(B, 2), 128))
    B_pad = _round_up(B, TB)

    # Lane-dense streamed operand: one cheap wrapper-side transpose of the
    # only big array; padded columns give harmless values, sliced off below.
    x_t = jnp.pad(x.T, ((0, 0), (0, B_pad - B)))                 # (F, B_pad)

    # One-time tiny parameter transforms (columns broadcast along lanes).
    inv_a_col = (1.0 / a).reshape(FM, 1)
    b_col = b.reshape(FM, 1)
    c_col = c.reshape(FM, 1)
    w1_t = w1.T                                                  # (H, FM)
    b1_col = b1.reshape(H, 1)
    w2_row = w2.reshape(1, H)
    b2_s = b2.reshape((1,))

    # rep_t[f*M + m, f] = 1: matches mf.reshape(B, -1) column ordering.
    rep_t = (jnp.arange(FM)[:, None] // M
             == jnp.arange(F)[None, :]).astype(jnp.float32)      # (FM, F)

    resident = lambda shape: pl.BlockSpec(shape, lambda i: (0, 0))

    # Note: w1 (FM x H) stays fully VMEM-resident, fine at ANFIS-scale sizes;
    # for very large FM*H (v7x only has 64 MiB VMEM) tile it over an extra
    # "arbitrary" grid axis with a VMEM accumulator instead.
    out_t = pl.pallas_call(
        functools.partial(_anfis_kernel, b_is_one=b_is_one),
        out_shape=jax.ShapeDtypeStruct((1, B_pad), jnp.float32),
        grid=(B_pad // TB,),
        in_specs=[
            pl.BlockSpec((F, TB), lambda i: (0, i)),             # x^T: streamed, lane-dense
            resident((FM, F)),                                   # replication matrix^T
            resident((FM, 1)),                                   # 1/a
            resident((FM, 1)),                                   # b
            resident((FM, 1)),                                   # c
            resident((H, FM)),                                   # w1^T
            resident((H, 1)),                                    # b1
            resident((1, H)),                                    # w2 (as a row)
            pl.BlockSpec(memory_space=pltpu.MemorySpace.SMEM),   # b2 scalar in SMEM
        ],
        out_specs=pl.BlockSpec((1, TB), lambda i: (0, i)),       # lane-dense output
        compiler_params=pltpu.CompilerParams(
            dimension_semantics=("parallel",)),                  # batch tiles shard on v7x
    )(x_t, rep_t, inv_a_col, b_col, c_col, w1_t, b1_col, w2_row, b2_s)

    return out_t[0, :B].reshape(B, 1)


def simple_anfis_forward(x, a, b, c, w1, b1, w2, b2, *, block_b=4096):
    """x: (B, F); a/b/c: (F, M); w1: (F*M, H); b1: (H,); w2: (H, 1); b2: (1,)."""
    # Resolve the b == 1 fast path at trace time (b == 1 is the module's init).
    try:
        b_is_one = bool(jnp.all(b == 1.0))
    except jax.errors.ConcretizationTypeError:  # b is a tracer: general path
        b_is_one = False
    return _anfis_forward(x, a, b, c, w1, b1, w2, b2,
                          block_b=block_b, b_is_one=b_is_one)


def init_params(in_features, mf_per_input, hidden_dim, key):
    """Parameter init matching the PyTorch module's shapes (BellMF init exact)."""
    F, M, H = in_features, mf_per_input, hidden_dim
    a = jnp.ones((F, M), jnp.float32)
    b = jnp.ones((F, M), jnp.float32)
    c = jnp.tile(jnp.linspace(0.0, 1.0, M, dtype=jnp.float32), (F, 1))
    k1, k2, k3, k4 = jax.random.split(key, 4)
    w1 = jax.random.normal(k1, (F * M, H), jnp.float32) * 0.1
    b1 = jax.random.normal(k2, (H,), jnp.float32) * 0.1
    w2 = jax.random.normal(k3, (H, 1), jnp.float32) * 0.1
    b2 = jax.random.normal(k4, (1,), jnp.float32) * 0.1
    return a, b, c, w1, b1, w2, b2


def reference_forward(x, a, b, c, w1, b1, w2, b2):
    """Pure-JAX reference mirroring the PyTorch module (original pow form)."""
    mf = 1.0 / (1.0 + jnp.abs((x[:, :, None] - c[None]) / a[None]) ** (2.0 * b[None]))
    combined = mf.reshape(x.shape[0], -1)
    h = jnp.maximum(combined @ w1 + b1, 0.0)
    return h @ w2 + b2


if __name__ == "__main__":
    B, F, M, H = 8, 4, 3, 16
    key = jax.random.PRNGKey(0)
    kx, kp, kb = jax.random.split(key, 3)
    x = jax.random.uniform(kx, (B, F), jnp.float32)
    a, b, c, w1, b1, w2, b2 = init_params(F, M, H, kp)

    # Path 1: b == 1 (PyTorch init) -> approx-reciprocal Bell MF fast path.
    out = jax.block_until_ready(simple_anfis_forward(x, a, b, c, w1, b1, w2, b2))
    ref = reference_forward(x, a, b, c, w1, b1, w2, b2)
    assert out.shape == (B, 1)
    assert jnp.allclose(out, ref, atol=5e-3, rtol=5e-3), (out, ref)

    # Path 2: general b != 1 -> tanh/log Bell MF path (exact).
    b_gen = 1.0 + jax.random.uniform(kb, (F, M), jnp.float32)
    out_g = jax.block_until_ready(simple_anfis_forward(x, a, b_gen, c, w1, b1, w2, b2))
    ref_g = reference_forward(x, a, b_gen, c, w1, b1, w2, b2)
    assert jnp.allclose(out_g, ref_g, atol=1e-4, rtol=1e-4), (out_g, ref_g)

    print("KERNEL_OK")
</pallas_src>

<mosaic_0001>
module attributes {stable_mosaic.version = 11 : i64} {
  func.func @_anfis_kernel(%arg0: i32, %arg1: memref<4x128xf32, #tpu.memory_space<vmem>>, %arg2: memref<12x4xf32, #tpu.memory_space<vmem>>, %arg3: memref<12x1xf32, #tpu.memory_space<vmem>>, %arg4: memref<12x1xf32, #tpu.memory_space<vmem>>, %arg5: memref<12x1xf32, #tpu.memory_space<vmem>>, %arg6: memref<16x12xf32, #tpu.memory_space<vmem>>, %arg7: memref<16x1xf32, #tpu.memory_space<vmem>>, %arg8: memref<1x16xf32, #tpu.memory_space<vmem>>, %arg9: memref<1xf32, #tpu.memory_space<smem>>, %arg10: memref<1x128xf32, #tpu.memory_space<vmem>>) attributes {dimension_semantics = [#tpu.dimension_semantics<parallel>], iteration_bounds = array<i64: 1>, scalar_prefetch = 0 : i64, scratch_operands = 0 : i64, tpu.core_type = #tpu.core_type<tc>, window_params = [{transform_indices = @transform_0, window_bounds = array<i64: 4, 128>}, {pipeline_mode = #tpu.pipeline_mode<synchronous>, transform_indices = @transform_1, window_bounds = array<i64: 12, 4>}, {pipeline_mode = #tpu.pipeline_mode<synchronous>, transform_indices = @transform_2, window_bounds = array<i64: 12, 1>}, {pipeline_mode = #tpu.pipeline_mode<synchronous>, transform_indices = @transform_3, window_bounds = array<i64: 12, 1>}, {pipeline_mode = #tpu.pipeline_mode<synchronous>, transform_indices = @transform_4, window_bounds = array<i64: 12, 1>}, {pipeline_mode = #tpu.pipeline_mode<synchronous>, transform_indices = @transform_5, window_bounds = array<i64: 16, 12>}, {pipeline_mode = #tpu.pipeline_mode<synchronous>, transform_indices = @transform_6, window_bounds = array<i64: 16, 1>}, {pipeline_mode = #tpu.pipeline_mode<synchronous>, transform_indices = @transform_7, window_bounds = array<i64: 1, 16>}, {transform_indices = @transform_8, window_bounds = array<i64: 1>}, {transform_indices = @transform_9, window_bounds = array<i64: 1, 128>}]} {
    %c0 = arith.constant 0 : index
    %c0_0 = arith.constant 0 : index
    %0 = vector.load %arg2[%c0, %c0_0] : memref<12x4xf32, #tpu.memory_space<vmem>>, vector<12x4xf32>
    %c0_1 = arith.constant 0 : index
    %c0_2 = arith.constant 0 : index
    %1 = vector.load %arg1[%c0_1, %c0_2] : memref<4x128xf32, #tpu.memory_space<vmem>>, vector<4x128xf32>
    %cst = arith.constant dense<0.000000e+00> : vector<12x128xf32>
    %2 = tpu.matmul %0, %1, %cst {dimension_numbers = #tpu.dot_dimension_numbers<[1], [0], [0], [1], [0, 0, 1, 1], [], []>} : vector<12x4xf32>, vector<4x128xf32>, vector<12x128xf32> -> vector<12x128xf32>
    %c0_3 = arith.constant 0 : index
    %c0_4 = arith.constant 0 : index
    %3 = vector.load %arg5[%c0_3, %c0_4] : memref<12x1xf32, #tpu.memory_space<vmem>>, vector<12x1xf32>
    %4 = vector.broadcast %3 : vector<12x1xf32> to vector<12x128xf32>
    %5 = arith.subf %2, %4 : vector<12x128xf32>
    %c0_5 = arith.constant 0 : index
    %c0_6 = arith.constant 0 : index
    %6 = vector.load %arg3[%c0_5, %c0_6] : memref<12x1xf32, #tpu.memory_space<vmem>>, vector<12x1xf32>
    %7 = vector.broadcast %6 : vector<12x1xf32> to vector<12x128xf32>
    %8 = arith.mulf %5, %7 : vector<12x128xf32>
    %9 = arith.mulf %8, %8 : vector<12x128xf32>
    %cst_7 = arith.constant 1.000000e+00 : f32
    %10 = vector.broadcast %cst_7 : f32 to vector<12x128xf32>
    %11 = arith.addf %10, %9 : vector<12x128xf32>
    %12 = tpu.reciprocal %11 {approx = true} : vector<12x128xf32> -> vector<12x128xf32>
    %c0_8 = arith.constant 0 : index
    %c0_9 = arith.constant 0 : index
    %13 = vector.load %arg6[%c0_8, %c0_9] : memref<16x12xf32, #tpu.memory_space<vmem>>, vector<16x12xf32>
    %cst_10 = arith.constant dense<0.000000e+00> : vector<16x128xf32>
    %14 = tpu.matmul %13, %12, %cst_10 {dimension_numbers = #tpu.dot_dimension_numbers<[1], [0], [0], [1], [0, 0, 1, 1], [], []>} : vector<16x12xf32>, vector<12x128xf32>, vector<16x128xf32> -> vector<16x128xf32>
    %c0_11 = arith.constant 0 : index
    %c0_12 = arith.constant 0 : index
    %15 = vector.load %arg7[%c0_11, %c0_12] : memref<16x1xf32, #tpu.memory_space<vmem>>, vector<16x1xf32>
    %16 = vector.broadcast %15 : vector<16x1xf32> to vector<16x128xf32>
    %17 = arith.addf %14, %16 : vector<16x128xf32>
    %cst_13 = arith.constant 0.000000e+00 : f32
    %18 = vector.broadcast %cst_13 : f32 to vector<16x128xf32>
    %19 = arith.maximumf %17, %18 : vector<16x128xf32>
    %c0_14 = arith.constant 0 : index
    %c0_15 = arith.constant 0 : index
    %20 = vector.load %arg8[%c0_14, %c0_15] : memref<1x16xf32, #tpu.memory_space<vmem>>, vector<1x16xf32>
    %cst_16 = arith.constant dense<0.000000e+00> : vector<1x128xf32>
    %21 = tpu.matmul %20, %19, %cst_16 {dimension_numbers = #tpu.dot_dimension_numbers<[1], [0], [0], [1], [0, 0, 1, 1], [], []>} : vector<1x16xf32>, vector<16x128xf32>, vector<1x128xf32> -> vector<1x128xf32>
    %c0_17 = arith.constant 0 : index
    %22 = memref.load %arg9[%c0_17] : memref<1xf32, #tpu.memory_space<smem>>
    %23 = vector.broadcast %22 : f32 to vector<1x128xf32>
    %24 = arith.addf %21, %23 : vector<1x128xf32>
    %c0_18 = arith.constant 0 : index
    %c0_19 = arith.constant 0 : index
    %25 = vector.load %arg10[%c0_18, %c0_19] : memref<1x128xf32, #tpu.memory_space<vmem>>, vector<1x128xf32>
    tpu.vector_store %arg10[%c0_18, %c0_19], %24 {strides = array<i32>} : memref<1x128xf32, #tpu.memory_space<vmem>>, vector<1x128xf32>,
    return
  }
  func.func @transform_0(%arg0: i32) -> (i32, i32) {
    %c0_i32 = arith.constant 0 : i32
    %c0_i32_0 = arith.constant 0 : i32
    return %c0_i32, %arg0 : i32, i32
  }
  func.func @transform_1(%arg0: i32) -> (i32, i32) {
    %c0_i32 = arith.constant 0 : i32
    %c0_i32_0 = arith.constant 0 : i32
    %c0_i32_1 = arith.constant 0 : i32
    return %c0_i32, %c0_i32_0 : i32, i32
  }
  func.func @transform_2(%arg0: i32) -> (i32, i32) {
    %c0_i32 = arith.constant 0 : i32
    %c0_i32_0 = arith.constant 0 : i32
    %c0_i32_1 = arith.constant 0 : i32
    return %c0_i32, %c0_i32_0 : i32, i32
  }
  func.func @transform_3(%arg0: i32) -> (i32, i32) {
    %c0_i32 = arith.constant 0 : i32
    %c0_i32_0 = arith.constant 0 : i32
    %c0_i32_1 = arith.constant 0 : i32
    return %c0_i32, %c0_i32_0 : i32, i32
  }
  func.func @transform_4(%arg0: i32) -> (i32, i32) {
    %c0_i32 = arith.constant 0 : i32
    %c0_i32_0 = arith.constant 0 : i32
    %c0_i32_1 = arith.constant 0 : i32
    return %c0_i32, %c0_i32_0 : i32, i32
  }
  func.func @transform_5(%arg0: i32) -> (i32, i32) {
    %c0_i32 = arith.constant 0 : i32
    %c0_i32_0 = arith.constant 0 : i32
    %c0_i32_1 = arith.constant 0 : i32
    return %c0_i32, %c0_i32_0 : i32, i32
  }
  func.func @transform_6(%arg0: i32) -> (i32, i32) {
    %c0_i32 = arith.constant 0 : i32
    %c0_i32_0 = arith.constant 0 : i32
    %c0_i32_1 = arith.constant 0 : i32
    return %c0_i32, %c0_i32_0 : i32, i32
  }
  func.func @transform_7(%arg0: i32) -> (i32, i32) {
    %c0_i32 = arith.constant 0 : i32
    %c0_i32_0 = arith.constant 0 : i32
    %c0_i32_1 = arith.constant 0 : i32
    return %c0_i32, %c0_i32_0 : i32, i32
  }
  func.func @transform_8(%arg0: i32) -> i32 {
    %c0_i32 = arith.constant 0 : i32
    %c0_i32_0 = arith.constant 0 : i32
    return %c0_i32 : i32
  }
  func.func @transform_9(%arg0: i32) -> (i32, i32) {
    %c0_i32 = arith.constant 0 : i32
    %c0_i32_0 = arith.constant 0 : i32
    return %c0_i32, %arg0 : i32, i32
  }
}

</mosaic_0001>

<bundles_post_ra>
// kernel: _anfis_forward.1
= control target key start
LH: loop header
LB: loop body
LE: loop exit
PB: predicated region body
PF: predicated region fallthrough
CT: control target
= control target key end

     0   :  { %vm43_vm0 = vcmask 1043456   ;;  %vm36_vm1 = vcmask 31744   ;;  %v395_v3 = vmov 0   ;;  %vm170_vm2 = vcmask 97280   ;;  %s497_s0 = inlined_call_operand.vmem [shape: f32[4,128], index: 0, kind: input, shape index: {}]   ;;  %s498_s3 = inlined_call_operand.vmem [shape: f32[12,1], index: 3, kind: input, shape index: {}]   ;;  %s499_s1 = inlined_call_operand.vmem [shape: f32[12,4], index: 1, kind: input, shape index: {}]   ;;  %s500_s4 = inlined_call_operand.vmem [shape: f32[12,1], index: 4, kind: input, shape index: {}]   ;;  %s501_s2 = inlined_call_operand.vmem [shape: f32[12,1], index: 2, kind: input, shape index: {}]   ;;  %s502_s6 = inlined_call_operand.vmem [shape: f32[16,1], index: 6, kind: input, shape index: {}]   ;;  %s503_s5 = inlined_call_operand.vmem [shape: f32[16,12], index: 5, kind: input, shape index: {}]   ;;  %s504_s7 = inlined_call_operand.vmem [shape: f32[1,16], index: 7, kind: input, shape index: {}]   ;;  %s505_s8 = inlined_call_operand.<no memory space> [shape: f32[1], index: 8, kind: input, shape index: {}]   ;;  %s506_s9 = inlined_call_operand.vmem [shape: f32[1,128], index: 9, kind: output, shape index: {}]  }
   0x1   :  { %v35_v0 = vld [vmem:[%s497_s0] sm:$0xf]  ;;  %v34_v2 = vld [vmem:[%s499_s1 + $0x8] sm:$0xf]  ;;  %389 = vset.pattern.permute.xlu0 %v395_v3  ;;  %390 = vset.pattern.permute.xlu1 %v395_v3  ;;  %vm396_vm3 = vmmov 1   ;;  %v397_v29 = vmov 0.0|0.0   ;;  %v259_v41 = vstv %s505_s8 }
   0x2   :  { %v33_v1 = vld [vmem:[%s499_s1] sm:$0xff]  ;;  %356 = vmatprep.subr.msk.mxu0 %vm43_vm0, %v35_v0  ;;  %v123_v6 = vld [vmem:[%s500_s4 + $0x8] sm:$0xf]  ;;  %vm376_vm4 = vmpackc.low %vm43_vm0, %vm396_vm3  ;;  %vm398_vm5 = vmmov 0   ;;  %v399_v30 = vmov 0.0   ;;  %vm260_vm6 = vcmask 130048  }
   0x3   :  { %358 = vmatprep.mubr.msk.f32.mxu0 %vm36_vm1, %v33_v1  ;;  %v122_v4 = vld [vmem:[%s500_s4] sm:$0xff]  ;;  %357 = vmatpush3.msk.msra.mxu0 %vm43_vm0, %v35_v0  ;;  %v137_v7 = vld [vmem:[%s501_s2 + $0x8] sm:$0xf] }
   0x4   :  { %v136_v5 = vld [vmem:[%s501_s2] sm:$0xff]  ;;  %126 = vperm.xlu0 %389, %v122_v4   ;;  %359 = vmatmul.mubr.msk.f32.vlgmr.msra.gmra.mrb[0].mxu0 %vm36_vm1, %v34_v2  ;;  %v159_v9 = vld [vmem:[%s502_s6 + $0x8] sm:$0xff] }
   0x5   :  { %140 = vperm.xlu1 %390, %v136_v5   ;;  %v158_v8 = vld [vmem:[%s502_s6] sm:$0xff]  ;;  %v157_v28 = vld [vmem:[%s503_s5 + $0x8] sm:$0xff]  ;;  %381 = vmatprep.subr.bf16.mxu0 %v397_v29 }
   0x6   :  { %v156_v10 = vld [vmem:[%s503_s5] sm:$0xff]  ;;  %372 = vmatprep.mubr.msk.f32.mxu0 %vm398_vm5, %v399_v30 }
   0x7   :  { %365 = vmatprep.mubr.msk.f32.mxu1 %vm170_vm2, %v156_v10  ;;  %v257_v40 = vld [vmem:[%s504_s7] sm:$0x1] }
   0x8   :  { %131 = vperm.xlu0 %389, %v123_v6  }
   0x9   :  { %145 = vperm.xlu1 %390, %v137_v7  }
   0xc   :  { %162 = vperm.xlu0 %389, %v158_v8  }
   0xd   :  { %167 = vperm.xlu1 %390, %v159_v9  }
  0x83   :  { %v127_v11 = vpop.permute.xlu0 %126 }
  0x84   :  { %v141_v12 = vpop.permute.xlu1 %140 }
  0x87   :  { %v132_v13 = vpop.permute.xlu0 %131 }
  0x88   :  { %v146_v17 = vpop.permute.xlu1 %145 }
  0x8b   :  { %v163_v33 = vpop.permute.xlu0 %162 }
  0x8c   :  { %v168_v31 = vpop.permute.xlu1 %167 }
  0xd7   :  { %v360_v14 = vpop.f32.mrb[0].mxu0 }
  0xd8   :  { %v135_v15 = vsub.f32 %v360_v14, %v132_v13  ;;  %v113_v16 = vpop.f32.mrb[1].mxu0 }
  0xd9   :  { %v134_v18 = vsub.f32 %v113_v16, %v127_v11 }
  0xda   :  { %v149_v19 = vmul.f32 %v146_v17, %v135_v15 }
  0xdb   :  { %v148_v20 = vmul.f32 %v141_v12, %v134_v18 }
  0xdc   :  { %v151_v21 = vmul.f32 %v149_v19, %v149_v19 }
  0xdd   :  { %v150_v22 = vmul.f32 %v148_v20, %v148_v20 }
  0xde   :  { %v153_v23 = vadd.f32 1.0, %v151_v21 }
  0xdf   :  { %v152_v24 = vadd.f32 1.0, %v150_v22 }
  0xe0   :  { %391 = vrcp.f32 %v153_v23 }
  0xe1   :  { %393 = vrcp.f32 %v152_v24 }
  0xea   :  { %v392_v25 = vpop.eup %391 }
  0xeb   :  { %v394_v26 = vpop.eup %393 }
  0xec   :  { %v375_v27 = vpack.c.bf16 %v392_v25, %v394_v26 }
  0xee   :  { %377 = vmatprep.subr.msk.bf16.mxu1 %vm376_vm4, %v375_v27 }
  0xef   :  { %380 = vmatpush3.bf16.msk.msra.mxu1 %vm376_vm4, %v375_v27 }
  0xf2   :  { %366 = vmatmul.mubr.msk.f32.vlgmr.msra.gmra.mrb[0].mxu1 %vm170_vm2, %v157_v28 }
 0x1c5   :  { %v367_v32 = vpop.f32.mrb[0].mxu1 }
 0x1c6   :  { %v252_v34 = vadd.f32 %v367_v32, %v168_v31  ;;  %v246_v35 = vpop.f32.mrb[1].mxu1 }
 0x1c7   :  { %v247_v36 = vadd.f32 %v246_v35, %v163_v33 }
 0x1c8   :  { %v256_v37 = vmax.f32 %v252_v34, 0.0 }
 0x1c9   :  { %v255_v38 = vmax.f32 %v247_v36, 0.0 }
 0x1cb   :  { %v382_v39 = vpack.c.bf16 %v256_v37, %v255_v38 }
 0x1cd   :  { %383 = vmatpush3.bf16.msra.mxu0 %v382_v39 }
 0x1d0   :  { %373 = vmatmul.mubr.msk.f32.vlgmr.msra.gmra.mrb[2].mxu0 %vm260_vm6, %v257_v40 }
 0x2a3   :  { %v330_v42 = vpop.f32.mrb[2].mxu0 }
 0x2a4   :  { %v331_v43 = vadd.f32 %v330_v42, %v259_v41  ;;  %v374_v44 = vpop.f32.mrb[3].mxu0 }
 0x2a6   :  { %334 = vst [vmem:[%s506_s9] sm:$0x1] %v331_v43 }

</bundles_post_ra>
